<compile_context>
chip_gen: v5e
topology: v5e:2x2
jax: 0.10.0
libtpu: 0.0.40
codegen_flags: <defaults>
</compile_context>

<pallas_src>
import functools

import jax
import jax.numpy as jnp
from jax.experimental import pallas as pl
from jax.experimental.pallas import tpu as pltpu

LN_EPS = 1e-5  # torch.nn.LayerNorm default


def csgu_kernel(xr_ref, xg_ref, xgp_ref, xgn_ref, gamma_ref, beta_ref, w_ref,
                bias_ref, o_ref, xg_sc, *, kernel_size: int, pad: int, halo: int):
    """One (batch, time-tile) step.

    xr_ref/xg_ref: (1, tT, C) current-tile views of the two halves of x.
    xgp_ref/xgn_ref: (1, halo, C) previous/next-tile halo rows of the x_g half.
    gamma/beta/bias: (1, C); w: (K, C).
    xg_sc: (tT + 2*halo, C) VMEM scratch holding LN'd rows with zero edge padding.
    """
    t = pl.program_id(1)
    n_t = pl.num_programs(1)
    tT = xg_ref.shape[1]
    C = xg_ref.shape[2]
    cdtype = xg_sc.dtype

    gamma = gamma_ref[0].astype(jnp.float32)   # (C,)
    beta = beta_ref[0].astype(jnp.float32)     # (C,)

    def layer_norm(v):  # (rows, C) -> (rows, C); stats in f32 (matches PyTorch)
        v32 = v.astype(jnp.float32)
        mean = jnp.mean(v32, axis=-1, keepdims=True)
        cen = v32 - mean
        var = jnp.mean(cen * cen, axis=-1, keepdims=True)
        return ((cen * jax.lax.rsqrt(var + LN_EPS)) * gamma[None, :]
                + beta[None, :]).astype(cdtype)

    # --- Assemble the LN'd, zero-padded window in scratch (all stores 8-row aligned) ---
    # Center: rows [halo, halo + tT)  <- LN(current tile)
    xg_sc[halo:halo + tT, :] = layer_norm(xg_ref[0])

    # Left halo: rows [0, halo)  <- zeros at the sequence start, else LN(prev-tile rows)
    @pl.when(t == 0)
    def _():
        xg_sc[0:halo, :] = jnp.zeros((halo, C), cdtype)

    @pl.when(t != 0)
    def _():
        xg_sc[0:halo, :] = layer_norm(xgp_ref[0])

    # Right halo: rows [halo+tT, halo+tT+halo) <- zeros at the end, else LN(next-tile rows)
    @pl.when(t == n_t - 1)
    def _():
        xg_sc[halo + tT:halo + tT + halo, :] = jnp.zeros((halo, C), cdtype)

    @pl.when(t != n_t - 1)
    def _():
        xg_sc[halo + tT:halo + tT + halo, :] = layer_norm(xgn_ref[0])

    # --- Depthwise Conv1d along T: K static shifted reads from the padded scratch ---
    # out[j] = bias + sum_k w[k] * xg_n[j + k - pad]; scratch row (halo + j) == xg_n row j.
    w = w_ref[...].astype(jnp.float32)          # (K, C)
    base = halo - pad
    acc = w[0][None, :] * xg_sc[base:base + tT, :].astype(jnp.float32)
    for k in range(1, kernel_size):             # small static K -> unrolled
        acc = acc + w[k][None, :] * xg_sc[base + k:base + k + tT, :].astype(jnp.float32)

    # --- Gating (activation = Identity, dropout = Identity at rate 0); bias added once ---
    bias = bias_ref[0].astype(jnp.float32)
    o_ref[0] = (xr_ref[0].astype(jnp.float32) * (acc + bias[None, :])).astype(o_ref.dtype)


def _choose_time_tile(T, halo, C, itemsize, max_tile=512, target_bytes=2 << 20):
    """Largest multiple-of-`halo` divisor of T whose (tile, C) block is ~<= target_bytes."""
    target = min(max_tile, max(halo, target_bytes // max(1, C * itemsize)))
    target = max(halo, (target // halo) * halo)
    best = None
    for m in range(halo, T + 1, halo):
        if T % m != 0:
            continue
        if m <= target:
            best = m                   # keep the largest divisor <= target
        elif best is None:
            best = m                   # nothing fits: smallest divisor above target
            break
    return best if best is not None else T


def csgu_forward(x, gamma, beta, conv_w, conv_b, kernel_size, *, time_tile=None):
    """x: (B, T, D_hidden). Returns (out (B, T, D_hidden // 2), cache=None)."""
    B, T, D = x.shape
    assert D % 2 == 0, "hidden size must be even (x is chunked into two halves)"
    C = D // 2
    assert kernel_size % 2 == 1, "non-causal 'same' conv requires odd kernel_size"
    assert C % 128 == 0, (
        f"channels per half ({C}) must be a multiple of 128 for a lane-dense layout "
        "and for the BlockSpec-based channel split")

    pad = (kernel_size - 1) // 2
    halo = max(8, ((pad + 7) // 8) * 8)          # sublane-aligned halo rows (>= pad)

    if T % halo == 0:
        if (time_tile is not None and time_tile % halo == 0
                and 0 < time_tile <= T and T % time_tile == 0):
            tT = int(time_tile)
        else:
            tT = _choose_time_tile(T, halo, C, jnp.dtype(x.dtype).itemsize)
        r = tT // halo                            # halo-blocks per time tile
        n_halo_blocks = T // halo
        prev_map = lambda b, t: (b, jnp.maximum(t * r - 1, 0), 1)
        next_map = lambda b, t: (b, jnp.minimum((t + 1) * r, n_halo_blocks - 1), 1)
    else:
        # TODO(synk): ragged T fallback — whole sequence per grid step (halo blocks unused).
        tT = T
        prev_map = lambda b, t: (b, 0, 1)
        next_map = lambda b, t: (b, 0, 1)
    n_t = T // tT

    # Small parameter reshapes only (no big staging copies of x).
    # PyTorch depthwise Conv1d weight is (C, 1, K) -> lane-friendly (K, C).
    w_kc = jnp.transpose(conv_w[:, 0, :], (1, 0))
    gamma2 = gamma.reshape(1, C)
    beta2 = beta.reshape(1, C)
    bias2 = conv_b.reshape(1, C)

    in_specs = [
        pl.BlockSpec((1, tT, C), lambda b, t: (b, t, 0)),       # x_r  (first half of x)
        pl.BlockSpec((1, tT, C), lambda b, t: (b, t, 1)),       # x_g  (second half of x)
        pl.BlockSpec((1, halo, C), prev_map),                   # x_g left halo rows
        pl.BlockSpec((1, halo, C), next_map),                   # x_g right halo rows
        pl.BlockSpec((1, C), lambda b, t: (0, 0)),              # LN gamma
        pl.BlockSpec((1, C), lambda b, t: (0, 0)),              # LN beta
        pl.BlockSpec((kernel_size, C), lambda b, t: (0, 0)),    # conv weight (K, C)
        pl.BlockSpec((1, C), lambda b, t: (0, 0)),              # conv bias
    ]

    out = pl.pallas_call(
        functools.partial(csgu_kernel, kernel_size=kernel_size, pad=pad, halo=halo),
        out_shape=jax.ShapeDtypeStruct((B, T, C), x.dtype),
        grid_spec=pltpu.PrefetchScalarGridSpec(
            num_scalar_prefetch=0,
            grid=(B, n_t),
            in_specs=in_specs,
            out_specs=pl.BlockSpec((1, tT, C), lambda b, t: (b, t, 0)),
            scratch_shapes=[pltpu.VMEM((tT + 2 * halo, C), x.dtype)],
        ),
        # Both axes write disjoint output blocks -> safe to shard over v7x's 2 TCs.
        # Tiles are sized (~<=2 MiB per block) to stay under the default scoped VMEM
        # limit on all generations; raise vmem_limit_bytes here if larger tiles are wanted.
        compiler_params=pltpu.CompilerParams(
            dimension_semantics=("parallel", "parallel")),
    )(x, x, x, x, gamma2, beta2, w_kc, bias2)
    return out, None


def csgu_reference(x, gamma, beta, conv_w, conv_b, kernel_size):
    """Pure-JAX reference matching the PyTorch forward (non-causal, no dropout)."""
    C = x.shape[-1] // 2
    x_r, x_g = x[..., :C], x[..., C:]
    mean = jnp.mean(x_g, axis=-1, keepdims=True)
    var = jnp.mean((x_g - mean) ** 2, axis=-1, keepdims=True)
    xg_n = (x_g - mean) / jnp.sqrt(var + LN_EPS) * gamma + beta
    pad = (kernel_size - 1) // 2
    xg_p = jnp.pad(xg_n, ((0, 0), (pad, pad), (0, 0)))
    T = x.shape[1]
    acc = jnp.broadcast_to(conv_b[None, None, :], x_r.shape)
    for k in range(kernel_size):
        acc = acc + conv_w[:, 0, k][None, None, :] * xg_p[:, k:k + T, :]
    return x_r * acc


if __name__ == "__main__":
    # Small but lane-dense shapes: size=256 -> channels per half C=128.
    B, T, size, K = 2, 64, 256, 7
    C = size // 2

    key = jax.random.PRNGKey(0)
    kx, kg, kb, kw, kc = jax.random.split(key, 5)
    x = jax.random.normal(kx, (B, T, size), dtype=jnp.float32)
    ln_gamma = 1.0 + 0.1 * jax.random.normal(kg, (C,), dtype=jnp.float32)
    ln_beta = 0.1 * jax.random.normal(kb, (C,), dtype=jnp.float32)
    conv_w = jax.random.normal(kw, (C, 1, K), dtype=jnp.float32) * 0.3  # (C, 1, K)
    conv_b = 0.1 * jax.random.normal(kc, (C,), dtype=jnp.float32)

    ref = csgu_reference(x, ln_gamma, ln_beta, conv_w, conv_b, K)

    # Multi-tile path (exercises the conv halo blocks and edge zero-padding).
    out_tiled, cache = csgu_forward(x, ln_gamma, ln_beta, conv_w, conv_b, K, time_tile=16)
    out_tiled = jax.block_until_ready(out_tiled)
    assert out_tiled.shape == (B, T, C)
    assert cache is None
    assert jnp.allclose(out_tiled, ref, atol=1e-5, rtol=1e-5), "tiled kernel mismatch"

    # Default tile choice (single time-tile for this small T).
    out_def, _ = csgu_forward(x, ln_gamma, ln_beta, conv_w, conv_b, K)
    out_def = jax.block_until_ready(out_def)
    assert jnp.allclose(out_def, ref, atol=1e-5, rtol=1e-5), "default kernel mismatch"

    print("KERNEL_OK")
</pallas_src>

<mosaic_0001>
module attributes {stable_mosaic.version = 11 : i64} {
  func.func @csgu_kernel(%arg0: i32, %arg1: i32, %arg2: memref<1x16x128xf32, #tpu.memory_space<vmem>>, %arg3: memref<1x16x128xf32, #tpu.memory_space<vmem>>, %arg4: memref<1x8x128xf32, #tpu.memory_space<vmem>>, %arg5: memref<1x8x128xf32, #tpu.memory_space<vmem>>, %arg6: memref<1x128xf32, #tpu.memory_space<vmem>>, %arg7: memref<1x128xf32, #tpu.memory_space<vmem>>, %arg8: memref<7x128xf32, #tpu.memory_space<vmem>>, %arg9: memref<1x128xf32, #tpu.memory_space<vmem>>, %arg10: memref<1x16x128xf32, #tpu.memory_space<vmem>>, %arg11: memref<32x128xf32, #tpu.memory_space<vmem>>) attributes {dimension_semantics = [#tpu.dimension_semantics<parallel>, #tpu.dimension_semantics<parallel>], iteration_bounds = array<i64: 2, 4>, scalar_prefetch = 0 : i64, scratch_operands = 1 : i64, tpu.core_type = #tpu.core_type<tc>, window_params = [{transform_indices = @transform_0, window_bounds = array<i64: 1, 16, 128>}, {transform_indices = @transform_1, window_bounds = array<i64: 1, 16, 128>}, {transform_indices = @transform_2, window_bounds = array<i64: 1, 8, 128>}, {transform_indices = @transform_3, window_bounds = array<i64: 1, 8, 128>}, {pipeline_mode = #tpu.pipeline_mode<synchronous>, transform_indices = @transform_4, window_bounds = array<i64: 1, 128>}, {pipeline_mode = #tpu.pipeline_mode<synchronous>, transform_indices = @transform_5, window_bounds = array<i64: 1, 128>}, {pipeline_mode = #tpu.pipeline_mode<synchronous>, transform_indices = @transform_6, window_bounds = array<i64: 7, 128>}, {pipeline_mode = #tpu.pipeline_mode<synchronous>, transform_indices = @transform_7, window_bounds = array<i64: 1, 128>}, {transform_indices = @transform_8, window_bounds = array<i64: 1, 16, 128>}]} {
    %c0 = arith.constant 0 : index
    %c0_0 = arith.constant 0 : index
    %0 = vector.load %arg6[%c0, %c0_0] : memref<1x128xf32, #tpu.memory_space<vmem>>, vector<1x128xf32>
    %1 = vector.shape_cast %0 : vector<1x128xf32> to vector<128xf32>
    %c0_1 = arith.constant 0 : index
    %c0_2 = arith.constant 0 : index
    %2 = vector.load %arg7[%c0_1, %c0_2] : memref<1x128xf32, #tpu.memory_space<vmem>>, vector<1x128xf32>
    %3 = vector.shape_cast %2 : vector<1x128xf32> to vector<128xf32>
    %c0_3 = arith.constant 0 : index
    %c0_4 = arith.constant 0 : index
    %c0_5 = arith.constant 0 : index
    %4 = vector.load %arg3[%c0_3, %c0_4, %c0_5] : memref<1x16x128xf32, #tpu.memory_space<vmem>>, vector<1x16x128xf32>
    %5 = vector.shape_cast %4 : vector<1x16x128xf32> to vector<16x128xf32>
    %cst = arith.constant dense<0.000000e+00> : vector<16xf32>
    %6 = vector.multi_reduction <add>, %5, %cst [1] : vector<16x128xf32> to vector<16xf32>
    %7 = vector.shape_cast %6 : vector<16xf32> to vector<16x1xf32>
    %cst_6 = arith.constant 1.280000e+02 : f32
    %8 = vector.broadcast %cst_6 : f32 to vector<16x1xf32>
    %9 = arith.divf %7, %8 : vector<16x1xf32>
    %10 = vector.broadcast %9 : vector<16x1xf32> to vector<16x128xf32>
    %11 = arith.subf %5, %10 : vector<16x128xf32>
    %12 = arith.mulf %11, %11 : vector<16x128xf32>
    %cst_7 = arith.constant dense<0.000000e+00> : vector<16xf32>
    %13 = vector.multi_reduction <add>, %12, %cst_7 [1] : vector<16x128xf32> to vector<16xf32>
    %14 = vector.shape_cast %13 : vector<16xf32> to vector<16x1xf32>
    %cst_8 = arith.constant 1.280000e+02 : f32
    %15 = vector.broadcast %cst_8 : f32 to vector<16x1xf32>
    %16 = arith.divf %14, %15 : vector<16x1xf32>
    %cst_9 = arith.constant 9.99999974E-6 : f32
    %17 = vector.broadcast %cst_9 : f32 to vector<16x1xf32>
    %18 = arith.addf %16, %17 : vector<16x1xf32>
    %19 = math.rsqrt %18 : vector<16x1xf32>
    %20 = vector.broadcast %19 : vector<16x1xf32> to vector<16x128xf32>
    %21 = arith.mulf %11, %20 : vector<16x128xf32>
    %22 = vector.shape_cast %1 : vector<128xf32> to vector<1x128xf32>
    %23 = vector.broadcast %22 : vector<1x128xf32> to vector<16x128xf32>
    %24 = arith.mulf %21, %23 : vector<16x128xf32>
    %25 = vector.shape_cast %3 : vector<128xf32> to vector<1x128xf32>
    %26 = vector.broadcast %25 : vector<1x128xf32> to vector<16x128xf32>
    %27 = arith.addf %24, %26 : vector<16x128xf32>
    %c8 = arith.constant 8 : index
    %c0_10 = arith.constant 0 : index
    %28 = vector.load %arg11[%c8, %c0_10] : memref<32x128xf32, #tpu.memory_space<vmem>>, vector<16x128xf32>
    tpu.vector_store %arg11[%c8, %c0_10], %27 {strides = array<i32>} : memref<32x128xf32, #tpu.memory_space<vmem>>, vector<16x128xf32>,
    %c0_i32 = arith.constant 0 : i32
    %29 = arith.cmpi eq, %arg1, %c0_i32 : i32
    %30 = arith.extui %29 : i1 to i32
    %c0_i32_11 = arith.constant 0 : i32
    %31 = arith.cmpi ne, %30, %c0_i32_11 : i32
    scf.if %31 {
      %cst_35 = arith.constant 0.000000e+00 : f32
      %101 = vector.broadcast %cst_35 : f32 to vector<8x128xf32>
      %c0_36 = arith.constant 0 : index
      %c0_37 = arith.constant 0 : index
      %102 = vector.load %arg11[%c0_36, %c0_37] : memref<32x128xf32, #tpu.memory_space<vmem>>, vector<8x128xf32>
      tpu.vector_store %arg11[%c0_36, %c0_37], %101 {strides = array<i32>} : memref<32x128xf32, #tpu.memory_space<vmem>>, vector<8x128xf32>,
    } else {
    }
    %c0_i32_12 = arith.constant 0 : i32
    %32 = arith.cmpi ne, %arg1, %c0_i32_12 : i32
    %33 = arith.extui %32 : i1 to i32
    %c0_i32_13 = arith.constant 0 : i32
    %34 = arith.cmpi ne, %33, %c0_i32_13 : i32
    scf.if %34 {
      %c0_35 = arith.constant 0 : index
      %c0_36 = arith.constant 0 : index
      %c0_37 = arith.constant 0 : index
      %101 = vector.load %arg4[%c0_35, %c0_36, %c0_37] : memref<1x8x128xf32, #tpu.memory_space<vmem>>, vector<1x8x128xf32>
      %102 = vector.shape_cast %101 : vector<1x8x128xf32> to vector<8x128xf32>
      %cst_38 = arith.constant dense<0.000000e+00> : vector<8xf32>
      %103 = vector.multi_reduction <add>, %102, %cst_38 [1] : vector<8x128xf32> to vector<8xf32>
      %104 = vector.shape_cast %103 : vector<8xf32> to vector<8x1xf32>
      %cst_39 = arith.constant 1.280000e+02 : f32
      %105 = vector.broadcast %cst_39 : f32 to vector<8x1xf32>
      %106 = arith.divf %104, %105 : vector<8x1xf32>
      %107 = vector.broadcast %106 : vector<8x1xf32> to vector<8x128xf32>
      %108 = arith.subf %102, %107 : vector<8x128xf32>
      %109 = arith.mulf %108, %108 : vector<8x128xf32>
      %cst_40 = arith.constant dense<0.000000e+00> : vector<8xf32>
      %110 = vector.multi_reduction <add>, %109, %cst_40 [1] : vector<8x128xf32> to vector<8xf32>
      %111 = vector.shape_cast %110 : vector<8xf32> to vector<8x1xf32>
      %cst_41 = arith.constant 1.280000e+02 : f32
      %112 = vector.broadcast %cst_41 : f32 to vector<8x1xf32>
      %113 = arith.divf %111, %112 : vector<8x1xf32>
      %cst_42 = arith.constant 9.99999974E-6 : f32
      %114 = vector.broadcast %cst_42 : f32 to vector<8x1xf32>
      %115 = arith.addf %113, %114 : vector<8x1xf32>
      %116 = math.rsqrt %115 : vector<8x1xf32>
      %117 = vector.broadcast %116 : vector<8x1xf32> to vector<8x128xf32>
      %118 = arith.mulf %108, %117 : vector<8x128xf32>
      %119 = vector.shape_cast %1 : vector<128xf32> to vector<1x128xf32>
      %120 = vector.broadcast %119 : vector<1x128xf32> to vector<8x128xf32>
      %121 = arith.mulf %118, %120 : vector<8x128xf32>
      %122 = vector.shape_cast %3 : vector<128xf32> to vector<1x128xf32>
      %123 = vector.broadcast %122 : vector<1x128xf32> to vector<8x128xf32>
      %124 = arith.addf %121, %123 : vector<8x128xf32>
      %c0_43 = arith.constant 0 : index
      %c0_44 = arith.constant 0 : index
      %125 = vector.load %arg11[%c0_43, %c0_44] : memref<32x128xf32, #tpu.memory_space<vmem>>, vector<8x128xf32>
      tpu.vector_store %arg11[%c0_43, %c0_44], %124 {strides = array<i32>} : memref<32x128xf32, #tpu.memory_space<vmem>>, vector<8x128xf32>,
    } else {
    }
    %c3_i32 = arith.constant 3 : i32
    %35 = arith.cmpi eq, %arg1, %c3_i32 : i32
    %36 = arith.extui %35 : i1 to i32
    %c0_i32_14 = arith.constant 0 : i32
    %37 = arith.cmpi ne, %36, %c0_i32_14 : i32
    scf.if %37 {
      %cst_35 = arith.constant 0.000000e+00 : f32
      %101 = vector.broadcast %cst_35 : f32 to vector<8x128xf32>
      %c24 = arith.constant 24 : index
      %c0_36 = arith.constant 0 : index
      %102 = vector.load %arg11[%c24, %c0_36] : memref<32x128xf32, #tpu.memory_space<vmem>>, vector<8x128xf32>
      tpu.vector_store %arg11[%c24, %c0_36], %101 {strides = array<i32>} : memref<32x128xf32, #tpu.memory_space<vmem>>, vector<8x128xf32>,
    } else {
    }
    %c3_i32_15 = arith.constant 3 : i32
    %38 = arith.cmpi ne, %arg1, %c3_i32_15 : i32
    %39 = arith.extui %38 : i1 to i32
    %c0_i32_16 = arith.constant 0 : i32
    %40 = arith.cmpi ne, %39, %c0_i32_16 : i32
    scf.if %40 {
      %c0_35 = arith.constant 0 : index
      %c0_36 = arith.constant 0 : index
      %c0_37 = arith.constant 0 : index
      %101 = vector.load %arg5[%c0_35, %c0_36, %c0_37] : memref<1x8x128xf32, #tpu.memory_space<vmem>>, vector<1x8x128xf32>
      %102 = vector.shape_cast %101 : vector<1x8x128xf32> to vector<8x128xf32>
      %cst_38 = arith.constant dense<0.000000e+00> : vector<8xf32>
      %103 = vector.multi_reduction <add>, %102, %cst_38 [1] : vector<8x128xf32> to vector<8xf32>
      %104 = vector.shape_cast %103 : vector<8xf32> to vector<8x1xf32>
      %cst_39 = arith.constant 1.280000e+02 : f32
      %105 = vector.broadcast %cst_39 : f32 to vector<8x1xf32>
      %106 = arith.divf %104, %105 : vector<8x1xf32>
      %107 = vector.broadcast %106 : vector<8x1xf32> to vector<8x128xf32>
      %108 = arith.subf %102, %107 : vector<8x128xf32>
      %109 = arith.mulf %108, %108 : vector<8x128xf32>
      %cst_40 = arith.constant dense<0.000000e+00> : vector<8xf32>
      %110 = vector.multi_reduction <add>, %109, %cst_40 [1] : vector<8x128xf32> to vector<8xf32>
      %111 = vector.shape_cast %110 : vector<8xf32> to vector<8x1xf32>
      %cst_41 = arith.constant 1.280000e+02 : f32
      %112 = vector.broadcast %cst_41 : f32 to vector<8x1xf32>
      %113 = arith.divf %111, %112 : vector<8x1xf32>
      %cst_42 = arith.constant 9.99999974E-6 : f32
      %114 = vector.broadcast %cst_42 : f32 to vector<8x1xf32>
      %115 = arith.addf %113, %114 : vector<8x1xf32>
      %116 = math.rsqrt %115 : vector<8x1xf32>
      %117 = vector.broadcast %116 : vector<8x1xf32> to vector<8x128xf32>
      %118 = arith.mulf %108, %117 : vector<8x128xf32>
      %119 = vector.shape_cast %1 : vector<128xf32> to vector<1x128xf32>
      %120 = vector.broadcast %119 : vector<1x128xf32> to vector<8x128xf32>
      %121 = arith.mulf %118, %120 : vector<8x128xf32>
      %122 = vector.shape_cast %3 : vector<128xf32> to vector<1x128xf32>
      %123 = vector.broadcast %122 : vector<1x128xf32> to vector<8x128xf32>
      %124 = arith.addf %121, %123 : vector<8x128xf32>
      %c24 = arith.constant 24 : index
      %c0_43 = arith.constant 0 : index
      %125 = vector.load %arg11[%c24, %c0_43] : memref<32x128xf32, #tpu.memory_space<vmem>>, vector<8x128xf32>
      tpu.vector_store %arg11[%c24, %c0_43], %124 {strides = array<i32>} : memref<32x128xf32, #tpu.memory_space<vmem>>, vector<8x128xf32>,
    } else {
    }
    %c0_17 = arith.constant 0 : index
    %c0_18 = arith.constant 0 : index
    %41 = vector.load %arg8[%c0_17, %c0_18] : memref<7x128xf32, #tpu.memory_space<vmem>>, vector<7x128xf32>
    %42 = vector.extract_strided_slice %41 {offsets = [0, 0], sizes = [1, 128], strides = [1, 1]} : vector<7x128xf32> to vector<1x128xf32>
    %43 = vector.shape_cast %42 : vector<1x128xf32> to vector<128xf32>
    %44 = vector.shape_cast %43 : vector<128xf32> to vector<1x128xf32>
    %c5 = arith.constant 5 : index
    %c0_19 = arith.constant 0 : index
    %45 = vector.load %arg11[%c5, %c0_19] : memref<32x128xf32, #tpu.memory_space<vmem>>, vector<16x128xf32>
    %46 = vector.broadcast %44 : vector<1x128xf32> to vector<16x128xf32>
    %47 = arith.mulf %46, %45 : vector<16x128xf32>
    %48 = vector.extract_strided_slice %41 {offsets = [1, 0], sizes = [1, 128], strides = [1, 1]} : vector<7x128xf32> to vector<1x128xf32>
    %49 = vector.shape_cast %48 : vector<1x128xf32> to vector<128xf32>
    %50 = vector.shape_cast %49 : vector<128xf32> to vector<1x128xf32>
    %c6 = arith.constant 6 : index
    %c0_20 = arith.constant 0 : index
    %51 = vector.load %arg11[%c6, %c0_20] : memref<32x128xf32, #tpu.memory_space<vmem>>, vector<16x128xf32>
    %52 = vector.broadcast %50 : vector<1x128xf32> to vector<16x128xf32>
    %53 = arith.mulf %52, %51 : vector<16x128xf32>
    %54 = arith.addf %47, %53 : vector<16x128xf32>
    %55 = vector.extract_strided_slice %41 {offsets = [2, 0], sizes = [1, 128], strides = [1, 1]} : vector<7x128xf32> to vector<1x128xf32>
    %56 = vector.shape_cast %55 : vector<1x128xf32> to vector<128xf32>
    %57 = vector.shape_cast %56 : vector<128xf32> to vector<1x128xf32>
    %c7 = arith.constant 7 : index
    %c0_21 = arith.constant 0 : index
    %58 = vector.load %arg11[%c7, %c0_21] : memref<32x128xf32, #tpu.memory_space<vmem>>, vector<16x128xf32>
    %59 = vector.broadcast %57 : vector<1x128xf32> to vector<16x128xf32>
    %60 = arith.mulf %59, %58 : vector<16x128xf32>
    %61 = arith.addf %54, %60 : vector<16x128xf32>
    %62 = vector.extract_strided_slice %41 {offsets = [3, 0], sizes = [1, 128], strides = [1, 1]} : vector<7x128xf32> to vector<1x128xf32>
    %63 = vector.shape_cast %62 : vector<1x128xf32> to vector<128xf32>
    %64 = vector.shape_cast %63 : vector<128xf32> to vector<1x128xf32>
    %c8_22 = arith.constant 8 : index
    %c0_23 = arith.constant 0 : index
    %65 = vector.load %arg11[%c8_22, %c0_23] : memref<32x128xf32, #tpu.memory_space<vmem>>, vector<16x128xf32>
    %66 = vector.broadcast %64 : vector<1x128xf32> to vector<16x128xf32>
    %67 = arith.mulf %66, %65 : vector<16x128xf32>
    %68 = arith.addf %61, %67 : vector<16x128xf32>
    %69 = vector.extract_strided_slice %41 {offsets = [4, 0], sizes = [1, 128], strides = [1, 1]} : vector<7x128xf32> to vector<1x128xf32>
    %70 = vector.shape_cast %69 : vector<1x128xf32> to vector<128xf32>
    %71 = vector.shape_cast %70 : vector<128xf32> to vector<1x128xf32>
    %c9 = arith.constant 9 : index
    %c0_24 = arith.constant 0 : index
    %72 = vector.load %arg11[%c9, %c0_24] : memref<32x128xf32, #tpu.memory_space<vmem>>, vector<16x128xf32>
    %73 = vector.broadcast %71 : vector<1x128xf32> to vector<16x128xf32>
    %74 = arith.mulf %73, %72 : vector<16x128xf32>
    %75 = arith.addf %68, %74 : vector<16x128xf32>
    %76 = vector.extract_strided_slice %41 {offsets = [5, 0], sizes = [1, 128], strides = [1, 1]} : vector<7x128xf32> to vector<1x128xf32>
    %77 = vector.shape_cast %76 : vector<1x128xf32> to vector<128xf32>
    %78 = vector.shape_cast %77 : vector<128xf32> to vector<1x128xf32>
    %c10 = arith.constant 10 : index
    %c0_25 = arith.constant 0 : index
    %79 = vector.load %arg11[%c10, %c0_25] : memref<32x128xf32, #tpu.memory_space<vmem>>, vector<16x128xf32>
    %80 = vector.broadcast %78 : vector<1x128xf32> to vector<16x128xf32>
    %81 = arith.mulf %80, %79 : vector<16x128xf32>
    %82 = arith.addf %75, %81 : vector<16x128xf32>
    %83 = vector.extract_strided_slice %41 {offsets = [6, 0], sizes = [1, 128], strides = [1, 1]} : vector<7x128xf32> to vector<1x128xf32>
    %84 = vector.shape_cast %83 : vector<1x128xf32> to vector<128xf32>
    %85 = vector.shape_cast %84 : vector<128xf32> to vector<1x128xf32>
    %c11 = arith.constant 11 : index
    %c0_26 = arith.constant 0 : index
    %86 = vector.load %arg11[%c11, %c0_26] : memref<32x128xf32, #tpu.memory_space<vmem>>, vector<16x128xf32>
    %87 = vector.broadcast %85 : vector<1x128xf32> to vector<16x128xf32>
    %88 = arith.mulf %87, %86 : vector<16x128xf32>
    %89 = arith.addf %82, %88 : vector<16x128xf32>
    %c0_27 = arith.constant 0 : index
    %c0_28 = arith.constant 0 : index
    %90 = vector.load %arg9[%c0_27, %c0_28] : memref<1x128xf32, #tpu.memory_space<vmem>>, vector<1x128xf32>
    %91 = vector.shape_cast %90 : vector<1x128xf32> to vector<128xf32>
    %c0_29 = arith.constant 0 : index
    %c0_30 = arith.constant 0 : index
    %c0_31 = arith.constant 0 : index
    %92 = vector.load %arg2[%c0_29, %c0_30, %c0_31] : memref<1x16x128xf32, #tpu.memory_space<vmem>>, vector<1x16x128xf32>
    %93 = vector.shape_cast %92 : vector<1x16x128xf32> to vector<16x128xf32>
    %94 = vector.shape_cast %91 : vector<128xf32> to vector<1x128xf32>
    %95 = vector.broadcast %94 : vector<1x128xf32> to vector<16x128xf32>
    %96 = arith.addf %89, %95 : vector<16x128xf32>
    %97 = arith.mulf %93, %96 : vector<16x128xf32>
    %c0_32 = arith.constant 0 : index
    %c0_33 = arith.constant 0 : index
    %c0_34 = arith.constant 0 : index
    %98 = vector.load %arg10[%c0_32, %c0_33, %c0_34] : memref<1x16x128xf32, #tpu.memory_space<vmem>>, vector<1x16x128xf32>
    %99 = vector.shape_cast %98 : vector<1x16x128xf32> to vector<16x128xf32>
    %100 = vector.shape_cast %97 : vector<16x128xf32> to vector<1x16x128xf32>
    tpu.vector_store %arg10[%c0_32, %c0_33, %c0_34], %100 {strides = array<i32>} : memref<1x16x128xf32, #tpu.memory_space<vmem>>, vector<1x16x128xf32>,
    return
  }
  func.func @transform_0(%arg0: i32, %arg1: i32) -> (i32, i32, i32) {
    %c0_i32 = arith.constant 0 : i32
    %c0_i32_0 = arith.constant 0 : i32
    return %arg0, %arg1, %c0_i32 : i32, i32, i32
  }
  func.func @transform_1(%arg0: i32, %arg1: i32) -> (i32, i32, i32) {
    %c1_i32 = arith.constant 1 : i32
    %c0_i32 = arith.constant 0 : i32
    return %arg0, %arg1, %c1_i32 : i32, i32, i32
  }
  func.func @transform_2(%arg0: i32, %arg1: i32) -> (i32, i32, i32) {
    %c2_i32 = arith.constant 2 : i32
    %0 = arith.muli %arg1, %c2_i32 : i32
    %c1_i32 = arith.constant 1 : i32
    %1 = arith.subi %0, %c1_i32 : i32
    %c0_i32 = arith.constant 0 : i32
    %2 = arith.maxsi %1, %c0_i32 : i32
    %c1_i32_0 = arith.constant 1 : i32
    %c0_i32_1 = arith.constant 0 : i32
    return %arg0, %2, %c1_i32_0 : i32, i32, i32
  }
  func.func @transform_3(%arg0: i32, %arg1: i32) -> (i32, i32, i32) {
    %c1_i32 = arith.constant 1 : i32
    %0 = arith.addi %arg1, %c1_i32 : i32
    %c2_i32 = arith.constant 2 : i32
    %1 = arith.muli %0, %c2_i32 : i32
    %c7_i32 = arith.constant 7 : i32
    %2 = arith.minsi %1, %c7_i32 : i32
    %c1_i32_0 = arith.constant 1 : i32
    %c0_i32 = arith.constant 0 : i32
    return %arg0, %2, %c1_i32_0 : i32, i32, i32
  }
  func.func @transform_4(%arg0: i32, %arg1: i32) -> (i32, i32) {
    %c0_i32 = arith.constant 0 : i32
    %c0_i32_0 = arith.constant 0 : i32
    %c0_i32_1 = arith.constant 0 : i32
    return %c0_i32, %c0_i32_0 : i32, i32
  }
  func.func @transform_5(%arg0: i32, %arg1: i32) -> (i32, i32) {
    %c0_i32 = arith.constant 0 : i32
    %c0_i32_0 = arith.constant 0 : i32
    %c0_i32_1 = arith.constant 0 : i32
    return %c0_i32, %c0_i32_0 : i32, i32
  }
  func.func @transform_6(%arg0: i32, %arg1: i32) -> (i32, i32) {
    %c0_i32 = arith.constant 0 : i32
    %c0_i32_0 = arith.constant 0 : i32
    %c0_i32_1 = arith.constant 0 : i32
    return %c0_i32, %c0_i32_0 : i32, i32
  }
  func.func @transform_7(%arg0: i32, %arg1: i32) -> (i32, i32) {
    %c0_i32 = arith.constant 0 : i32
    %c0_i32_0 = arith.constant 0 : i32
    %c0_i32_1 = arith.constant 0 : i32
    return %c0_i32, %c0_i32_0 : i32, i32
  }
  func.func @transform_8(%arg0: i32, %arg1: i32) -> (i32, i32, i32) {
    %c0_i32 = arith.constant 0 : i32
    %c0_i32_0 = arith.constant 0 : i32
    return %arg0, %arg1, %c0_i32 : i32, i32, i32
  }
}

</mosaic_0001>

<bundles_post_ra>
// kernel: tpu_custom_call.1
= control target key start
LH: loop header
LB: loop body
LE: loop exit
PB: predicated region body
PF: predicated region fallthrough
CT: control target
= control target key end

     0   :  { %s1900_s0 = inlined_call_operand.hbm [shape: f32[2,64,256], index: 0, kind: input, shape index: {}]   ;;  %s1901_s1 = inlined_call_operand.hbm [shape: f32[2,64,256], index: 1, kind: input, shape index: {}]   ;;  %s1902_s2 = inlined_call_operand.hbm [shape: f32[2,64,256], index: 2, kind: input, shape index: {}]   ;;  %s1903_s3 = inlined_call_operand.hbm [shape: f32[2,64,256], index: 3, kind: input, shape index: {}]   ;;  %s1904_s4 = inlined_call_operand.vmem [shape: f32[1,128], index: 4, kind: input, shape index: {}]   ;;  %s1905_s5 = inlined_call_operand.vmem [shape: f32[1,128], index: 5, kind: input, shape index: {}]   ;;  %s1906_s6 = inlined_call_operand.hbm [shape: f32[7,128], index: 6, kind: input, shape index: {}]   ;;  %s1907_s7 = inlined_call_operand.vmem [shape: f32[1,128], index: 7, kind: input, shape index: {}]   ;;  %s1908_s8 = inlined_call_operand.hbm [shape: f32[2,64,128], index: 8, kind: output, shape index: {}]  }
   0x1   :  { %1925 = sst [smem:[#allocation31_spill]] %s1900_s0 }
   0x2   :  { %1926 = sst [smem:[#allocation32_spill]] %s1901_s1 }
   0x3   :  { %1927 = sst [smem:[#allocation33_spill]] %s1902_s2 }
   0x4   :  { %1928 = sst [smem:[#allocation34_spill]] %s1903_s3 }
   0x5   :  { %1929 = sst [smem:[#allocation35_spill]] %s1904_s4 }
   0x6   :  { %1930 = sst [smem:[#allocation36_spill]] %s1905_s5 }
   0x7   :  { %1931 = sst [smem:[#allocation37_spill]] %s1906_s6 }
   0x8   :  { %1932 = sst [smem:[#allocation38_spill]] %s1907_s7 }
   0x9   :  { %1933 = sst [smem:[#allocation39_spill]] %s1908_s8 }
   0xa   :  { %13 = vsyncpa [#allocation4], 0 }
   0xb   :  { %15 = vsyncpa [#allocation4 + $0x1], 0 }
   0xc   :  { %16 = vsyncpa [#allocation7], 0 }
   0xd   :  { %18 = vsyncpa [#allocation7 + $0x1], 0 }
   0xe   :  { %19 = vsyncpa [#allocation10], 0 }
   0xf   :  { %21 = vsyncpa [#allocation10 + $0x1], 0 }
  0x10   :  { %22 = vsyncpa [#allocation5], 0 }
  0x11   :  { %24 = vsyncpa [#allocation5 + $0x1], 0  ;;  %s1509_s27 = smov 0   ;;  %s1511_s28 = smov 0  }
  0x12   :  { %s1513_s29 = smov 0   ;;  %s1515_s30 = smov 0  }
  0x13   :  { %s1517_s9 = smov 0   ;;  %s1519_s10 = smov 0  }
  0x14   :  { %s1521_s11 = smov 0   ;;  %s1523_s12 = smov 0  }
  0x15   :  { %s1525_s13 = smov 0   ;;  %s1527_s14 = smov 0  }
  0x16   :  { %s1529_s15 = smov 0   ;;  %s1531_s16 = smov 0  }
  0x17   :  { %s1533_s17 = smov 0   ;;  %s1535_s18 = smov 0  }
  0x18 LB: > { %1934 = sst [smem:[#allocation19_spill]] %s1401_s27  ;;  %s1580_s19 = sadd.s32 4294967295, %s1453_s18   ;;  %s1453_s18 = sphi %s1535_s18, %s30_s18   ;;  %s1449_s17 = sphi %s1533_s17, %s1987_s17   ;;  %s1445_s16 = sphi %s1531_s16, %s1997_s16   ;;  %s1441_s15 = sphi %s1529_s15, %s1985_s15   ;;  %s1437_s14 = sphi %s1527_s14, %s1996_s14   ;;  %s1433_s13 = sphi %s1525_s13, %s1995_s13   ;;  %s1429_s12 = sphi %s1523_s12, %s1994_s12   ;;  %s1425_s11 = sphi %s1521_s11, %s1984_s11   ;;  %s1421_s10 = sphi %s1519_s10, %s1993_s10   ;;  %s1417_s9 = sphi %s1517_s9, %s1992_s9   ;;  %s1413_s30 = sphi %s1515_s30, %s1991_s30   ;;  %s1409_s29 = sphi %s1513_s29, %s1990_s29   ;;  %s1405_s28 = sphi %s1511_s28, %s1989_s28   ;;  %s1401_s27 = sphi %s1509_s27, %s1988_s27  }
  0x19   : > { %1935 = sst [smem:[#allocation20_spill]] %s1425_s11  ;;  %s914_s20 = sadd.s32 4294967294, %s1453_s18  }
  0x1a   : > { %1936 = sst [smem:[#allocation21_spill]] %s1429_s12  ;;  %p64_p0 = scmp.ne.s32.totalorder %s1429_s12, %s1425_s11 }
  0x1b   : > { %1937 = sst [smem:[#allocation22_spill]] %s1437_s14  ;;  %p65_p1 = scmp.eq.s32.totalorder %s1580_s19, 0 }
  0x1c   : > { %1938 = sst [smem:[#allocation23_spill]] %s1441_s15  ;;  %p274_p2 = scmp.eq.s32.totalorder %s1580_s19, 7 }
  0x1d   : > { %1939 = sst [smem:[#allocation24_spill]] %s1449_s17  ;;  %p280_p3 = scmp.eq.s32.totalorder %s914_s20, 7 }
  0x1e   : > { %p1589_p4 = por %p65_p1, %p64_p0  ;;  %p921_p5 = scmp.ge.s32.totalorder %s1453_s18, 1 }
  0x1f   : > { %p1594_p6 = por %p280_p3, %p64_p0  ;;  %p287_p7 = scmp.lt.s32.totalorder %s1453_s18, 9 }
  0x20   : > { %s1940_s21 = scalar_select %p1589_p4, 1, 0 }
  0x21   : > { %s1942_s22 = scalar_select %p1594_p6, 1, 0 }
  0x22   : > { %1941 = sst [smem:[#allocation25_spill]] %s1940_s21  ;;  %p1602_p8 = pnand %p921_p5, %p287_p7 }
  0x23   : > { %1943 = sst [smem:[#allocation26_spill]] %s1942_s22  ;;  %s1455_s20 = smov [#allocation11]  }
  0x24   : > { %s1944_s6 = sld [smem:[#allocation37_spill]]  ;;  %p982_p9 = pneg %p1602_p8 }
  0x25   : > { %s1945_s26 = scalar_select %p1602_p8, 1, 0 }
  0x26   : > { %s307_s22 = sshll.u32 %s1455_s20, 4  ;;  %p983_p10 = pnand %p982_p9, %p65_p1  ;;  %s308_s22 = int_to_ptr.vmem [resolvable:$true] %s307_s22 }
  0x27   : > { %1946 = sst [smem:[#allocation27_spill]] %s1945_s26  ;;  %p59_p11 = scmp.eq.s32.totalorder %s1453_s18, 0 }
  0x28   : > { %p58_p12 = scmp.ne.s32.totalorder %s1433_s13, %s1429_s12  ;;  %p1922_p13 = scmp.lt.s32.totalorder %s1453_s18, 8 }
  0x29   : > { %s321_s24 = sand.u32 1, %s1433_s13   ;;  %s965_s20 = sshll.u32 %s1445_s16, 2 }
  0x2a   : > { %s305_s25 = sshll.u32 %s1944_s6, 4  ;;  %p60_p0 = por %p59_p11, %p58_p12  ;;  %s306_s25 = int_to_ptr.hbm [resolvable:$true] %s305_s25 }
  0x2b   : > { %985 = dma.hbm_to_vmem [thread:$0]  (!%p983_p10), %s306_s25, 128, %s308_s22, [#allocation10]  }
  0x2c   : > { %p1620_p3 = por %p274_p2, %p58_p12  ;;  %s924_s11 = sshll.u32 %s321_s24, 4 }
  0x2d   : > { %s1626_s8 = sshll.u32 %s1449_s17, 4  ;;  %p1630_p5 = pnand %p1922_p13, %p60_p0 }
  0x2e   : > { %s1947_s6 = scalar_select %p1620_p3, 1, 0 }
  0x2f   : > { %s331_s25 = sadd.s32 %s965_s20, %s1626_s8  ;;  %s1918_s7 = sand.u32 1, %s1453_s18  }
  0x30   : > { %1948 = sst [smem:[#allocation28_spill]] %s1947_s6  ;;  %s928_s23 = sshll.u32 %s331_s25, 3 }
  0x31   : > { %s1950_s1 = sld [smem:[#allocation32_spill]]  ;;  %s350_s6 = scalar_lea.vmem [#allocation6], %s924_s11 }
  0x32   : > { %s362_s21 = sshll.u32 %s350_s6, 4  ;;  %s1641_s26 = scalar_lea.sflag [#allocation7], %s1918_s7  ;;  %s363_s21 = int_to_ptr.vmem [resolvable:$true] %s362_s21 }
  0x33   : > { %s1456_s20 = smov 256   ;;  %s1457_s25 = smov 128  }
  0x34   : > { %s1458_s14 = smov 8   ;;  %s1951_s0 = sld [smem:[#allocation31_spill]] }
  0x35   : > { %s322_s7 = scalar_lea.sflag [#allocation4], %s321_s24  ;;  %s39_s27 = sadd.s32 1, %s1445_s16 }
  0x36   : > { %s42_s2 = sadd.s32 1, %s1449_s17  ;;  %p40_p2 = scmp.ge.s32.totalorder %s39_s27, 4 }
  0x37   : > { %s784_s5 = scalar_lea.hbm %s1950_s1, %s928_s23  ;;  %s325_s1 = scalar_lea.vmem [#allocation3], %s924_s11 }
  0x38   : > { %s785_s4 = scalar_lea.hbm %s784_s5, 8  ;;  %s336_s3 = sshll.u32 %s325_s1, 4  ;;  %s337_s3 = int_to_ptr.vmem [resolvable:$true] %s336_s3 }
  0x39   : > { %s360_s12 = sshll.u32 %s785_s4, 4  ;;  %s1999_s27 = smov (%p40_p2, %s39_s27), 0  ;;  %s361_s12 = int_to_ptr.hbm [resolvable:$true] %s360_s12 }
  0x3a   : > { %992 = dma.hbm_to_vmem [thread:$0]  (!%p1630_p5), %s361_s12, 256, %s363_s21, %s1641_s26, %s1456_s20, %s1457_s25, %s1458_s14  }
  0x3b   : > { %s333_s4 = scalar_lea.hbm %s1951_s0, %s928_s23  ;;  %s1920_s12 = sshll.u32 %s1445_s16, 1 }
  0x3c   : > { %s334_s15 = sshll.u32 %s333_s4, 4  ;;  %s916_s21 = sadd.s32 4294967295, %s1920_s12  ;;  %s335_s15 = int_to_ptr.hbm [resolvable:$true] %s334_s15 }
  0x3d   : > { %989 = dma.hbm_to_vmem [thread:$0]  (!%p1630_p5), %s335_s15, 256, %s337_s3, %s322_s7, %s1456_s20, %s1457_s25, %s1458_s14  }
  0x3e   : > { %s115_s23 = sadd.s32 1, %s1421_s10  ;;  %1952 = sst [smem:[#allocation29_spill]] %s1999_s27 }
  0x3f   : > { %s2001_s2 = smov (!%p40_p2, %s42_s2), %s1449_s17  ;;  %s47_s1 = ssub.s32 %s1445_s16, %s1999_s27 }
  0x40   : > { %p104_p7 = scmp.gt.s32.totalorder %s916_s21, 0  ;;  %p44_p9 = scmp.ge.s32.totalorder %s2001_s2, 2 }
  0x41   : > { %s1919_s3 = sshll.u32 %s1999_s27, 1  ;;  %p122_p10 = scmp.ne.s32.totalorder %s1421_s10, %s1417_s9 }
  0x42   : > { %s2003_s21 = smov (!%p104_p7, %s916_s21), 0  ;;  %s2005_s2 = smov (%p44_p9, %s2001_s2), 0 }
  0x43   : > { %1953 = sst [smem:[#allocation30_spill]] %s2005_s2  ;;  %s918_s7 = sadd.s32 4294967295, %s1919_s3 }
  0x44   : > { %s1671_s11 = ssub.s32 %s1449_s17, %s2005_s2  ;;  %p108_p12 = scmp.gt.s32.totalorder %s918_s7, 0 }
  0x45   : > { %s48_s24 = sor.u32 %s47_s1, %s1671_s11  ;;  %p1676_p0 = por %p122_p10, %p59_p11 }
  0x46   : > { %p49_p5 = scmp.eq.s32.totalorder %s48_s24, 0  ;;  %p128_p2 = scmp.ne.s32.totalorder %s1417_s9, %s1413_s30 }
  0x47   : > { %s2007_s7 = smov (!%p108_p12, %s918_s7), 0  ;;  %s1955_s20 = sadd.s32 1, %s1433_s13 }
  0x48   : > { %s1685_s25 = scalar_select %p49_p5, %s1433_s13, %s1955_s20  }
  0x49   : > { %s111_s14 = ssub.s32 %s2003_s21, %s2007_s7  ;;  %p1689_p7 = por %p128_p2, %p65_p1 }
  0x4a   : > { %s112_s6 = sor.u32 %s111_s14, %s1671_s11  ;;  %s374_s4 = sand.u32 1, %s1421_s10  }
  0x4b   : > { %p113_p9 = scmp.eq.s32.totalorder %s112_s6, 0  ;;  %s933_s15 = sshll.u32 %s374_s4, 3 }
  0x4c   : > { %s936_s30 = sshll.u32 %s2003_s21, 1  ;;  %s376_s7 = scalar_lea.vmem [#allocation8], %s933_s15 }
  0x4d   : > { %s1696_s1 = scalar_select %p113_p9, %s1421_s10, %s115_s23  }
  0x4e   : > { %s791_s24 = sadd.s32 %s936_s30, %s1626_s8  ;;  %s392_s20 = sshll.u32 %s376_s7, 4  ;;  %s393_s20 = int_to_ptr.vmem [resolvable:$true] %s392_s20 }
  0x4f   : > { %s938_s3 = sshll.u32 %s791_s24, 3  ;;  %s1957_s0 = sld [smem:[#allocation33_spill]] }
  0x50   : > { %s1958_s2 = sld [smem:[#allocation19_spill]]  ;;  %p993_p10 = pnand %p1922_p13, %p1676_p0 }
  0x51   : > { %s1959_s4 = sshll.u32 %s1445_s16, 1  ;;  %s1960_s30 = sshll.u32 %s1999_s27, 1 }
  0x52   : > { %s962_s15 = sadd.s32 2, %s1959_s4  ;;  %s964_s24 = sadd.s32 2, %s1960_s30 }
  0x53   : > { %p140_p12 = scmp.lt.s32.totalorder %s962_s15, 7  ;;  %p144_p5 = scmp.lt.s32.totalorder %s964_s24, 7 }
  0x54   : > { %s151_s12 = sadd.s32 1, %s1409_s29  ;;  %p158_p2 = scmp.ne.s32.totalorder %s1409_s29, %s1405_s28 }
  0x55   : > { %s793_s6 = scalar_lea.hbm %s1957_s0, %s938_s3  ;;  %s2009_s15 = smov (!%p140_p12, %s962_s15), 7 }
  0x56   : > { %s794_s21 = scalar_lea.hbm %s793_s6, 8  ;;  %s2011_s24 = smov (!%p144_p5, %s964_s24), 7 }
  0x57   : > { %s390_s23 = sshll.u32 %s794_s21, 4  ;;  %p1716_p0 = por %p158_p2, %p59_p11  ;;  %s391_s23 = int_to_ptr.hbm [resolvable:$true] %s390_s23 }
  0x58   : > { %995 = dma.hbm_to_vmem [thread:$0]  (!%p993_p10), %s391_s23, 128, %s393_s20, %s1641_s26  }
  0x59   : > { %p164_p9 = scmp.ne.s32.totalorder %s1405_s28, %s1958_s2  ;;  %s147_s26 = ssub.s32 %s2009_s15, %s2011_s24 }
  0x5a   : > { %s148_s3 = sor.u32 %s147_s26, %s1671_s11  ;;  %s401_s7 = sand.u32 1, %s1409_s29  }
  0x5b   : > { %p1725_p10 = por %p164_p9, %p65_p1  ;;  %p149_p13 = scmp.eq.s32.totalorder %s148_s3, 0 }
  0x5c   : > { %s939_s20 = sshll.u32 %s401_s7, 3  ;;  %s941_s14 = sshll.u32 %s2009_s15, 1 }
  0x5d   : > { %s1731_s6 = scalar_select %p149_p13, %s1409_s29, %s151_s12  }
  0x5e   : > { %s800_s21 = sadd.s32 %s941_s14, %s1626_s8  ;;  %s403_s4 = scalar_lea.vmem [#allocation9], %s939_s20 }
  0x5f   : > { %s943_s23 = sshll.u32 %s800_s21, 3  ;;  %s419_s2 = sshll.u32 %s403_s4, 4  ;;  %s420_s2 = int_to_ptr.vmem [resolvable:$true] %s419_s2 }
  0x60   : > { %s1963_s24 = sld [smem:[#allocation34_spill]]  ;;  %p1964_p11 = scmp.lt.s32.totalorder %s1453_s18, 8 }
  0x61   : > { %s1965_s3 = sand.u32 1, %s1453_s18   ;;  %s1967_s8 = sld [smem:[#allocation21_spill]] (!%p1602_p8) }
  0x62   : > { %p996_p12 = pnand %p1964_p11, %p1716_p0  ;;  %s400_s7 = scalar_lea.sflag [#allocation10], %s1965_s3 }
  0x65   : > { %428 = sbr.rel (%p1602_p8) target bundleno = 1004 (0x3ec), region = 52 }
  0x66   : > { %s802_s11 = scalar_lea.hbm %s1963_s24, %s943_s23 }
  0x67   : > { %s803_s26 = scalar_lea.hbm %s802_s11, 8  ;;  %s1746_s20 = sand.u32 (!%p1602_p8), 1, %s1967_s8  }
  0x68   : > { %s417_s17 = sshll.u32 %s803_s26, 4  ;;  %s1749_s27 = sshll.u32 (!%p1602_p8), %s1746_s20, 4  ;;  %s418_s17 = int_to_ptr.hbm [resolvable:$true] %s417_s17 }
  0x69   : > { %998 = dma.hbm_to_vmem [thread:$0]  (!%p996_p12), %s418_s17, 128, %s420_s2, %s400_s7  }
  0x6a   : > { %s431_s0 = scalar_lea.sflag [#allocation4], %s1746_s20  ;;  %s434_s14 = scalar_lea.vmem [#allocation3], %s1749_s27 }
  0x6b   : > { %1376 = dma.done.wait (%p1589_p4), %s431_s0, 256  }
  0x6c   : > { %1378 = vsyncadd (%p1589_p4), %s431_s0, 4294967040  ;;  %s440_s17 = sand.u32 1, %s1580_s19   ;;  %s444_s23 = scalar_lea.vmem [#allocation6], %s1749_s27 }
  0x6d   : > { %s441_s21 = scalar_lea.sflag [#allocation7], %s440_s17 }
  0x6e   : > { %1380 = dma.done.wait (%p1589_p4), %s441_s21, 256  }
  0x6f   : > { %1382 = vsyncadd (%p1589_p4), %s441_s21, 4294967040  ;;  %s452_s4 = sand.u32 1, %s1417_s9  }
  0x70   : > { %s1764_s2 = sshll.u32 %s452_s4, 3 }
  0x71   : > { %s454_s30 = scalar_lea.vmem [#allocation8], %s1764_s2 }
  0x72   : > { %1384 = dma.done.wait (%p1689_p7), %s441_s21, 128  }
  0x73   : > { %1386 = vsyncadd (%p1689_p7), %s441_s21, 4294967168  ;;  %s462_s24 = sand.u32 1, %s1405_s28   ;;  %s461_s26 = scalar_lea.sflag [#allocation10], %s440_s17 }
  0x74   : > { %s1772_s11 = sshll.u32 %s462_s24, 3 }
  0x75   : > { %s464_s3 = scalar_lea.vmem [#allocation9], %s1772_s11 }
  0x76   : > { %1388 = dma.done.wait (%p1725_p10), %s461_s26, 128  }
  0x77   : > { %1390 = vsyncadd (%p1725_p10), %s461_s26, 4294967168 }
  0x78   : > { %1392 = dma.done.wait (%p65_p1), [#allocation10], 128  }
  0x79   : > { %1394 = vsyncadd (%p65_p1), [#allocation10], 4294967168  ;;  %v531_v0 = vld [vmem:[%s444_s23] sm:$0xff]  ;;  %v532_v1 = vld [vmem:[%s444_s23 + $0x8] sm:$0xff]  ;;  %v1459_v2 = vmov 128.0   ;;  %s1969_s22 = sld [smem:[#allocation35_spill]] }
  0x7a   : > { %533 = vadd.xlane.f32.xlu0 %v531_v0  ;;  %1130 = vrcp.f32 %v1459_v2  ;;  %s1970_s8 = sld [smem:[#allocation36_spill]]  ;;  %s1804_s12 = scalar_lea.vmem [#allocation12], %s1749_s27 }
  0x7b   : > { %s1971_s0 = sld [smem:[#allocation22_spill]] }
  0x7f   : > { %v1792_v31 = vld [vmem:[%s1969_s22] ss:$0 sm:$0xff] }
  0x80   : > { %v1131_v3 = vpop.eup %1130  ;;  %v1797_v35 = vld [vmem:[%s1970_s8] ss:$0 sm:$0xff] }
  0x81   : > { %v538_v4 = vmul.f32 128.0, %v1131_v3  ;;  %vm542_vm0 = vweird.f32 %v1131_v3  ;;  %p951_p1 = scmp.ne.s32.totalorder %s1971_s0, 0 }
  0x82   : > { %535 = vadd.xlane.f32.xlu0 %v532_v1 }
  0x83   : > { %v539_v5 = vsub.f32 1.0, %v538_v4 }
  0x85   : > { %v540_v6 = vmul.f32 %v1131_v3, %v539_v5 }
  0x87   : > { %v541_v7 = vadd.f32 %v1131_v3, %v540_v6 }
  0x89   : > { %v1783_v8 = vsel %vm542_vm0, %v1131_v3, %v541_v7 }
  0xed   : > { %v534_v9 = vpop.xlane.xlu0 %533 }
  0xee   : > { %v544_v10 = vmul.f32 %v1783_v8, %v534_v9 }
  0xf0   : > { %v546_v11 = vsub.f32 %v531_v0, %v544_v10 }
  0xf2   : > { %v548_v12 = vmul.f32 %v546_v11, %v546_v11 }
  0xf4   : > { %550 = vadd.xlane.f32.xlu1 %v548_v12 }
  0xf5   : > { %v536_v13 = vpop.xlane.xlu0 %535 }
  0xf6   : > { %v545_v14 = vmul.f32 %v1783_v8, %v536_v13 }
  0xf8   : > { %v547_v15 = vsub.f32 %v532_v1, %v545_v14 }
  0xfa   : > { %v549_v16 = vmul.f32 %v547_v15, %v547_v15 }
  0xfc   : > { %552 = vadd.xlane.f32.xlu1 %v549_v16 }
 0x167   : > { %v551_v17 = vpop.xlane.xlu1 %550 }
 0x168   : > { %v554_v18 = vmul.f32 %v551_v17, %v1783_v8 }
 0x16a   : > { %v556_v19 = vadd.f32 1e-05, %v554_v18 }
 0x16c   : > { %1132 = vrsqrt.f32 %v556_v19  ;;  %vm564_vm2 = vweird.f32 %v556_v19 }
 0x16f   : > { %v553_v20 = vpop.xlane.xlu1 %552 }
 0x170   : > { %v555_v21 = vmul.f32 %v553_v20, %v1783_v8 }
 0x172   : > { %v1133_v22 = vpop.eup %1132  ;;  %v557_v23 = vadd.f32 1e-05, %v555_v21 }
 0x173   : > { %v559_v24 = vmul.f32 %v1133_v22, %v556_v19  ;;  %vm565_vm1 = vweird.f32 %v1133_v22 }
 0x174   : > { %1134 = vrsqrt.f32 %v557_v23  ;;  %vm566_vm3 = vmor %vm564_vm2, %vm565_vm1  ;;  %vm574_vm5 = vweird.f32 %v557_v23 }
 0x175   : > { %v560_v25 = vmul.f32 %v1133_v22, %v559_v24 }
 0x177   : > { %v561_v26 = vmul.f32 0.5, %v560_v25 }
 0x179   : > { %v562_v27 = vsub.f32 1.5, %v561_v26 }
 0x17a   : > { %v1135_v28 = vpop.eup %1134 }
 0x17b   : > { %v563_v29 = vmul.f32 %v1133_v22, %v562_v27  ;;  %v569_v30 = vmul.f32 %v1135_v28, %v557_v23  ;;  %vm575_vm4 = vweird.f32 %v1135_v28 }
 0x17c   : > { %vm576_vm6 = vmor %vm574_vm5, %vm575_vm4 }
 0x17d   : > { %v567_v32 = vsel %vm566_vm3, %v1133_v22, %v563_v29  ;;  %v570_v33 = vmul.f32 %v1135_v28, %v569_v30 }
 0x17e   : > { %v578_v34 = vmul.f32 %v567_v32, %v546_v11 }
 0x17f   : > { %v571_v36 = vmul.f32 0.5, %v570_v33 }
 0x180   : > { %v583_v37 = vmul.f32 %v1792_v31, %v578_v34 }
 0x181   : > { %v572_v38 = vsub.f32 1.5, %v571_v36 }
 0x182   : > { %v588_v39 = vadd.f32 %v1797_v35, %v583_v37 }
 0x183   : > { %v573_v40 = vmul.f32 %v1135_v28, %v572_v38 }
 0x184   : > { %590 = vst [vmem:[#allocation2 + $0x8] sm:$0xff] %v588_v39 }
 0x185   : > { %v577_v41 = vsel %vm576_vm6, %v1135_v28, %v573_v40 }
 0x186   : > { %v579_v42 = vmul.f32 %v577_v41, %v547_v15 }
 0x188   : > { %v584_v43 = vmul.f32 %v1792_v31, %v579_v42  ;;  %595 = sbr.rel (%p951_p1) target bundleno = 399 (0x18f), region = 76 }
 0x18a   : > { %v589_v44 = vadd.f32 %v1797_v35, %v584_v43 }
 0x18c   : > { %591 = vst [vmem:[#allocation2 + $0x10] sm:$0xff] %v589_v44 }
 0x18d   : > { %v1460_v45 = vmov 0.0  }
 0x18e   : > { %596 = vst [vmem:[#allocation2] sm:$0xff] %v1460_v45 }
 0x18f PF: > { %s1972_s17 = sld [smem:[#allocation22_spill]] }
 0x195   : > { %p952_p4 = scmp.eq.s32.totalorder %s1972_s17, 0 }
 0x197   : > { %600 = sbr.rel (%p952_p4) target bundleno = 680 (0x2a8), region = 80 }
 0x19c   : > { %v601_v46 = vld [vmem:[%s454_s30] sm:$0xff] }
 0x19d   : > { %602 = vadd.xlane.f32.xlu0 %v601_v46 }
 0x210   : > { %v603_v47 = vpop.xlane.xlu0 %602 }
 0x211   : > { %v604_v48 = vmul.f32 %v603_v47, %v1783_v8 }
 0x213   : > { %v605_v49 = vsub.f32 %v601_v46, %v604_v48 }
 0x215   : > { %v606_v50 = vmul.f32 %v605_v49, %v605_v49 }
 0x217   : > { %607 = vadd.xlane.f32.xlu0 %v606_v50 }
 0x28a   : > { %v608_v51 = vpop.xlane.xlu0 %607 }
 0x28b   : > { %v609_v52 = vmul.f32 %v608_v51, %v1783_v8 }
 0x28d   : > { %v610_v53 = vadd.f32 1e-05, %v609_v52 }
 0x28f   : > { %1136 = vrsqrt.f32 %v610_v53  ;;  %vm617_vm8 = vweird.f32 %v610_v53 }
 0x295   : > { %v1137_v54 = vpop.eup %1136 }
 0x296   : > { %v612_v55 = vmul.f32 %v1137_v54, %v610_v53  ;;  %vm618_vm7 = vweird.f32 %v1137_v54 }
 0x297   : > { %vm619_vm9 = vmor %vm617_vm8, %vm618_vm7 }
 0x298   : > { %v613_v56 = vmul.f32 %v1137_v54, %v612_v55 }
 0x29a   : > { %v614_v57 = vmul.f32 0.5, %v613_v56 }
 0x29c   : > { %v615_v58 = vsub.f32 1.5, %v614_v57 }
 0x29e   : > { %v616_v59 = vmul.f32 %v1137_v54, %v615_v58 }
 0x2a0   : > { %v620_v60 = vsel %vm619_vm9, %v1137_v54, %v616_v59 }
 0x2a1   : > { %v621_v61 = vmul.f32 %v620_v60, %v605_v49 }
 0x2a3   : > { %v622_v62 = vmul.f32 %v1792_v31, %v621_v61 }
 0x2a5   : > { %v623_v63 = vadd.f32 %v1797_v35, %v622_v62 }
 0x2a7   : > { %624 = vst [vmem:[#allocation2] sm:$0xff] %v623_v63 }
 0x2a8 PF: > { %s1973_s21 = sld [smem:[#allocation22_spill]] }
 0x2ae   : > { %p953_p8 = scmp.ne.s32.totalorder %s1973_s21, 3 }
 0x2b0   : > { %628 = sbr.rel (%p953_p8) target bundleno = 695 (0x2b7), region = 84 }
 0x2b5   : > { %v1461_v0 = vmov 0.0  }
 0x2b6   : > { %629 = vst [vmem:[#allocation2 + $0x18] sm:$0xff] %v1461_v0 }
 0x2b7 PF: > { %s1974_s23 = sld [smem:[#allocation22_spill]] }
 0x2bd   : > { %p954_p13 = scmp.eq.s32.totalorder %s1974_s23, 3 }
 0x2bf   : > { %633 = sbr.rel (%p954_p13) target bundleno = 976 (0x3d0), region = 88 }
 0x2c4   : > { %v634_v1 = vld [vmem:[%s464_s3] sm:$0xff] }
 0x2c5   : > { %635 = vadd.xlane.f32.xlu0 %v634_v1 }
 0x338   : > { %v636_v2 = vpop.xlane.xlu0 %635 }
 0x339   : > { %v637_v3 = vmul.f32 %v636_v2, %v1783_v8 }
 0x33b   : > { %v638_v4 = vsub.f32 %v634_v1, %v637_v3 }
 0x33d   : > { %v639_v5 = vmul.f32 %v638_v4, %v638_v4 }
 0x33f   : > { %640 = vadd.xlane.f32.xlu0 %v639_v5 }
 0x3b2   : > { %v641_v6 = vpop.xlane.xlu0 %640 }
 0x3b3   : > { %v642_v7 = vmul.f32 %v641_v6, %v1783_v8 }
 0x3b5   : > { %v643_v9 = vadd.f32 1e-05, %v642_v7 }
 0x3b7   : > { %1138 = vrsqrt.f32 %v643_v9  ;;  %vm650_vm11 = vweird.f32 %v643_v9 }
 0x3bd   : > { %v1139_v10 = vpop.eup %1138 }
 0x3be   : > { %v645_v11 = vmul.f32 %v1139_v10, %v643_v9  ;;  %vm651_vm10 = vweird.f32 %v1139_v10 }
 0x3bf   : > { %vm652_vm12 = vmor %vm650_vm11, %vm651_vm10 }
 0x3c0   : > { %v646_v12 = vmul.f32 %v1139_v10, %v645_v11 }
 0x3c2   : > { %v647_v13 = vmul.f32 0.5, %v646_v12 }
 0x3c4   : > { %v648_v14 = vsub.f32 1.5, %v647_v13 }
 0x3c6   : > { %v649_v15 = vmul.f32 %v1139_v10, %v648_v14 }
 0x3c8   : > { %v653_v16 = vsel %vm652_vm12, %v1139_v10, %v649_v15 }
 0x3c9   : > { %v654_v17 = vmul.f32 %v653_v16, %v638_v4 }
 0x3cb   : > { %v655_v18 = vmul.f32 %v1792_v31, %v654_v17 }
 0x3cd   : > { %v656_v19 = vadd.f32 %v1797_v35, %v655_v18 }
 0x3cf   : > { %657 = vst [vmem:[#allocation2 + $0x18] sm:$0xff] %v656_v19 }
 0x3d0 PF: > { %v658_v8 = vld [vmem:[#allocation11] sm:$0x7f]  ;;  %v671_v24 = vld [vmem:[#allocation2 + $0x7] sm:$0xff]  ;;  %s1975_s4 = sld [smem:[#allocation22_spill]]  ;;  %v672_v37 = vld [vmem:[#allocation2 + $0xf] sm:$0xff]  ;;  %s733_s21 = sshll.u32 %s1804_s12, 4  ;;  %s734_s21 = int_to_ptr.vmem [resolvable:$true] %s733_s21 }
 0x3d1   : > { %v659_v20 = vld [vmem:[#allocation2 + $0x5] sm:$0xff]  ;;  %v661_v22 = vperm.slane %v658_v8, 0  ;;  %v666_v23 = vperm.slane %v658_v8, 1  ;;  %v673_v25 = vperm.slane %v658_v8, 2  ;;  %v680_v27 = vperm.slane %v658_v8, 3  ;;  %s1976_s2 = sld [smem:[#allocation23_spill]] }
 0x3d2   : > { %v664_v21 = vld [vmem:[#allocation2 + $0x6] sm:$0xff]  ;;  %v687_v31 = vperm.slane %v658_v8, 4  ;;  %v694_v34 = vperm.slane %v658_v8, 5  ;;  %v665_v36 = vld [vmem:[#allocation2 + $0xe] sm:$0xff]  ;;  %v701_v44 = vperm.slane %v658_v8, 6  ;;  %s1977_s5 = sld [smem:[#allocation38_spill]] }
 0x3d3   : > { %v678_v26 = vld [vmem:[#allocation2 + $0x8] sm:$0xff]  ;;  %v662_v28 = vmul.f32 %v661_v22, %v659_v20  ;;  %v667_v29 = vmul.f32 %v666_v23, %v664_v21  ;;  %v674_v30 = vmul.f32 %v673_v25, %v671_v24  ;;  %v668_v40 = vmul.f32 %v666_v23, %v665_v36  ;;  %v679_v42 = vld [vmem:[#allocation2 + $0x10] sm:$0xff]  ;;  %s1978_s15 = sld [smem:[#allocation39_spill]] }
 0x3d4   : > { %v685_v32 = vld [vmem:[#allocation2 + $0x9] sm:$0xff]  ;;  %v681_v33 = vmul.f32 %v680_v27, %v678_v26  ;;  %v675_v41 = vmul.f32 %v673_v25, %v672_v37  ;;  %v682_v49 = vmul.f32 %v680_v27, %v679_v42 }
 0x3d5   : > { %v660_v35 = vld [vmem:[#allocation2 + $0xd] sm:$0xff]  ;;  %v669_v38 = vadd.f32 %v667_v29, %v662_v28  ;;  %v688_v47 = vmul.f32 %v687_v31, %v685_v32 }
 0x3d6   : > { %v663_v39 = vmul.f32 %v661_v22, %v660_v35  ;;  %v692_v43 = vld [vmem:[#allocation2 + $0xa] sm:$0xff]  ;;  %s956_s30 = sshll.u32 %s1975_s4, 1  ;;  %v693_v51 = vld [vmem:[#allocation2 + $0x12] sm:$0xff]  ;;  %s719_s4 = scalar_lea.sflag [#allocation5], %s1746_s20 }
 0x3d7   : > { %v686_v45 = vld [vmem:[#allocation2 + $0x11] sm:$0xff]  ;;  %s957_s24 = sshll.u32 %s1976_s2, 3  ;;  %v676_v46 = vadd.f32 %v674_v30, %v669_v38  ;;  %v695_v53 = vmul.f32 %v694_v34, %v692_v43  ;;  %v696_v60 = vmul.f32 %v694_v34, %v693_v51 }
 0x3d8   : > { %v670_v48 = vadd.f32 %v668_v40, %v663_v39  ;;  %v699_v50 = vld [vmem:[#allocation2 + $0xb] sm:$0xff]  ;;  %v689_v55 = vmul.f32 %v687_v31, %v686_v45  ;;  %s730_s11 = sadd.s32 %s957_s24, %s956_s30  ;;  %v700_v56 = vld [vmem:[#allocation2 + $0x13] sm:$0xff]  ;;  %v1140_v62 = vld [vmem:[%s1977_s5] ss:$0 sm:$0xff] }
 0x3d9   : > { %v683_v52 = vadd.f32 %v681_v33, %v676_v46  ;;  %v702_v58 = vmul.f32 %v701_v44, %v699_v50  ;;  %s958_s26 = sshll.u32 %s730_s11, 3  ;;  %v703_v0 = vmul.f32 %v701_v44, %v700_v56  ;;  %s1979_s8 = smov %s1978_s15  ;;  %v707_v3 = vld [vmem:[%s434_s14] sm:$0xff]  ;;  %v708_v6 = vld [vmem:[%s434_s14 + $0x8] sm:$0xff] }
 0x3da   : > { %v677_v54 = vadd.f32 %v675_v41, %v670_v48  ;;  %s732_s0 = scalar_lea.hbm %s1978_s15, %s958_s26  ;;  %s1311_s27 = scalar_lea.hbm %s1979_s8, 128 }
 0x3db   : > { %v690_v57 = vadd.f32 %v688_v47, %v683_v52  ;;  %s735_s23 = sshll.u32 %s732_s0, 4  ;;  %s736_s23 = int_to_ptr.hbm [resolvable:$true] %s735_s23 }
 0x3dc   : > { %v684_v59 = vadd.f32 %v682_v49, %v677_v54  ;;  %s1305_s2 = sshra.s32 %s736_s23, 4  ;;  %s1306_s2 = int_to_ptr.hbm [resolvable:$true] %s1305_s2 }
 0x3dd   : > { %v697_v61 = vadd.f32 %v695_v53, %v690_v57  ;;  %s1307_s30 = scalar_lea.hbm %s1306_s2, 16  ;;  %p1312_p0 = scmp.lt.s32.totalorder %s1306_s2, %s1979_s8 }
 0x3de   : > { %v691_v63 = vadd.f32 %v689_v55, %v684_v59  ;;  %p1308_p7 = scmp.ne.s32.totalorder %s1306_s2, %s1307_s30  ;;  %p1313_p9 = scmp.lt.s32.totalorder %s1311_s27, %s1307_s30 }
 0x3df   : > { %v704_v1 = vadd.f32 %v702_v58, %v697_v61 }
 0x3e0   : > { %v698_v2 = vadd.f32 %v696_v60, %v691_v63  ;;  %p1309_p5 = pnand %p1308_p7, %p1620_p3  ;;  %p1314_p10 = por %p1313_p9, %p1312_p0 }
 0x3e1   : > { %v712_v4 = vadd.f32 %v1140_v62, %v704_v1 }
 0x3e2   : > { %v705_v5 = vadd.f32 %v703_v0, %v698_v2  ;;  %p1310_p2 = pneg %p1309_p5 }
 0x3e3   : > { %v714_v7 = vmul.f32 %v712_v4, %v707_v3 }
 0x3e4   : > { %v713_v9 = vadd.f32 %v1140_v62, %v705_v5  ;;  %p1315_p11 = pnand %p1314_p10, %p1310_p2 }
 0x3e5   : > { %716 = vst [vmem:[%s1804_s12] sm:$0xff] %v714_v7 }
 0x3e6   : > { %v715_v10 = vmul.f32 %v713_v9, %v708_v6 }
 0x3e8   : > { %717 = vst [vmem:[%s1804_s12 + $0x8] sm:$0xff] %v715_v10 }
 0x3e9   : > { %1318 = shalt.err (!%p1315_p11)
}
 0x3ea   : > { %s1462_s20 = smov 128   ;;  %s1463_s12 = smov 8  }
 0x3eb   : > { %980 = dma.vmem_to_hbm [thread:$0]  (%p1620_p3), %s734_s21, 256, %s736_s23, %s719_s4, %s1462_s20, %s1462_s20, %s1463_s12  }
 0x3ec PF: > { %s1981_s3 = sld [smem:[#allocation20_spill]]  ;;  %p1006_p12 = scmp.ge.s32.totalorder %s1453_s18, 2 }
 0x3ee   : > { %p1000_p1 = pnand %p1006_p12, %p1594_p6 }
 0x3f0   : > { %p1001_p4 = pneg %p1000_p1 }
 0x3f2   : > { %s750_s5 = sand.u32 1, %s1981_s3  }
 0x3f3   : > { %s751_s22 = scalar_lea.sflag [#allocation5], %s750_s5 }
 0x3f4   : > { %1396 = dma.done.wait (%p1001_p4), %s751_s22, 256  }
 0x3f5   : > { %1398 = vsyncadd (%p1001_p4), %s751_s22, 4294967040  ;;  %s30_s18 = sadd.s32 1, %s1453_s18   ;;  %s1984_s11 = sld [smem:[#allocation21_spill]] }
 0x3f6   : > { %p1853_p8 = scmp.ge.s32.totalorder %s30_s18, 10   ;;  %s1985_s15 = sld [smem:[#allocation24_spill]] }
 0x3f7   : > { %s1986_s0 = sld [smem:[#allocation29_spill]]  ;;  %s1988_s27 = smov %s1405_s28 }
 0x3f8   : > { %s1987_s17 = sld [smem:[#allocation30_spill]]  ;;  %s1989_s28 = smov %s1409_s29 }
 0x3f9   : > { %s1990_s29 = smov %s1731_s6  ;;  %s1991_s30 = smov %s1417_s9 }
 0x3fa   : > { %s1992_s9 = smov %s1421_s10  ;;  %s1993_s10 = smov %s1696_s1 }
 0x3fb   : > { %s1994_s12 = smov %s1433_s13  ;;  %s1995_s13 = smov %s1685_s25 }
 0x3fc   : > { %s1996_s14 = smov %s1445_s16  ;;  %29 = sbr.rel (!%p1853_p8) target bundleno = 24 (0x18), region = 154 }
 0x3fd   : > { %s1997_s16 = smov %s1986_s0 }
 0x401   :  { %757 = vsyncpa [#allocation4], 1 }
 0x402   :  { %759 = vsyncpa [#allocation4 + $0x1], 1 }
 0x403   :  { %760 = vsyncpa [#allocation7], 1 }
 0x404   :  { %762 = vsyncpa [#allocation7 + $0x1], 1 }
 0x405   :  { %763 = vsyncpa [#allocation10], 1 }
 0x406   :  { %765 = vsyncpa [#allocation10 + $0x1], 1 }
 0x407   :  { %766 = vsyncpa [#allocation5], 1 }
 0x408   :  { %768 = vsyncpa [#allocation5 + $0x1], 1 }

</bundles_post_ra>
